<compile_context>
chip_gen: v5e
topology: v5e:2x2
jax: 0.10.0
libtpu: 0.0.40
codegen_flags: <defaults>
</compile_context>

<pallas_src>
import numpy as np
import jax
import jax.numpy as jnp
from jax.experimental import pallas as pl
from jax.experimental.pallas import tpu as pltpu

_PI = float(np.pi)
_COS_PI_6 = float(np.cos(np.pi / 6.0))
_LANE = 128


def _acos(x):
    # A&S 4.4.45: acos(a) ~= sqrt(1-a)*(a0 + a1*a + a2*a^2 + a3*a^3),
    # |err| <= 6.8e-5 rad on [0,1]; reflected for x < 0.  Caller guarantees
    # |x| <= 1 - 1e-5 (post-clip), so 1-a > 0 and no NaN guard is needed.
    # Outliers are counted in the cosine domain, so this error never flips an
    # outlier; it only perturbs the mean AE by < 6.8e-5 rad.
    a = jnp.abs(x)
    p = jnp.float32(-0.0187293)
    p = p * a + jnp.float32(0.0742610)
    p = p * a + jnp.float32(-0.2121144)
    p = p * a + jnp.float32(1.5707288)
    r = jnp.sqrt(1.0 - a) * p
    return jnp.where(x < 0.0, jnp.float32(_PI) - r, r)


def _ae_kernel(eps_ref, flow_ref, gt_ref, m_ref, out_ref):
    # flow_ref / gt_ref: (1, 2, R, 128); m_ref: (1, R, 128); out_ref: (1,1,8,128)
    eps = eps_ref[0]                                  # 0.01 / (flow_scaling*dt_gt/dt_input)
    fx = flow_ref[0, 0].astype(jnp.float32)           # unscaled flow (scale folded into eps)
    fy = flow_ref[0, 1].astype(jnp.float32)
    gx = gt_ref[0, 0].astype(jnp.float32)
    gy = gt_ref[0, 1].astype(jnp.float32)

    f2 = fx * fx + fy * fy                            # |flow|^2
    g2 = gx * gx + gy * gy                            # |gtflow|^2
    dot = fx * gx + fy * gy                           # sum(flow * gtflow, dim=1)
    norm_prod = jnp.sqrt(f2 * g2)                     # fused sqrt(a)*sqrt(b)

    # Exact divide (not approx reciprocal): acos is steep near the clip bounds.
    cos_angle = norm_prod / (dot + eps)
    cos_angle = jnp.clip(cos_angle, -1.0 + 1e-5, 1.0 - 1e-5)
    error = _acos(cos_angle)                          # torch.acos

    ev = m_ref[0] != 0                                # event_mask.bool(), native dtype
    gt_nz = g2 != 0.0                                 # ~(gx==0 & gy==0), reuses g2
    mask = jnp.logical_and(ev, gt_nz).astype(jnp.float32)

    err_m = error * mask
    # acos monotone decreasing: error > pi/6  <=>  cos_angle < cos(pi/6).
    outl = mask * (cos_angle < jnp.float32(_COS_PI_6)).astype(jnp.float32)

    # Per-lane partial sums (sublane reduce only); lane/tile reduce in JAX.
    # Single unmasked (8,128) store per grid step.
    s_err = jnp.sum(err_m, axis=0, keepdims=True)
    s_out = jnp.sum(outl, axis=0, keepdims=True)
    s_cnt = jnp.sum(mask, axis=0, keepdims=True)
    out_ref[0, 0] = jnp.concatenate(
        [s_err, s_out, s_cnt, jnp.zeros((5, _LANE), jnp.float32)], axis=0)


def angular_error(flow_map, gtflow, event_mask_last, dt_input, dt_gt,
                  flow_scaling=128.0, max_rows_per_tile=2048):
    """Pallas implementation of AE.forward(). Returns (AE, percent_AE), each (B,)."""
    B, C, H, W = flow_map.shape
    assert C == 2 and gtflow.shape == flow_map.shape
    HW = H * W

    # Sublane granularity for tiling: the (8,128) f32 tile grows for narrower
    # dtypes (bf16 -> 16 rows, int8/bool mask -> 32 rows).
    min_bytes = min(jnp.dtype(flow_map.dtype).itemsize,
                    jnp.dtype(gtflow.dtype).itemsize,
                    jnp.dtype(event_mask_last.dtype).itemsize)
    sub = 8 * max(4 // max(min_bytes, 1), 1)

    # Layout: HW -> (rows, 128).  Tile rows across the grid; padding (zeros =>
    # mask=0, contributes nothing) only happens when HW doesn't factor cleanly.
    rt = pl.cdiv(HW, _LANE)                       # total 128-lane rows
    nt = max(pl.cdiv(rt, max_rows_per_tile), 1)   # grid tiles along HW
    # v7x megacore: two TensorCores share the parallel grid -> prefer an even
    # number of total grid steps when there is enough work to split.
    if (B * nt) % 2 == 1 and rt > sub:
        nt += 1
    R = pl.cdiv(rt, nt)                           # rows per tile
    if nt > 1:
        R = ((R + sub - 1) // sub) * sub
    rt_pad = nt * R
    hw_pad = rt_pad * _LANE

    def plane4(x):                                # (B,2,H,W) -> (B,2,rt_pad,128)
        x = x.reshape(B, 2, HW)
        if hw_pad != HW:
            x = jnp.pad(x, ((0, 0), (0, 0), (0, hw_pad - HW)))
        return x.reshape(B, 2, rt_pad, _LANE)

    def plane3(x):                                # (B,H,W) -> (B,rt_pad,128)
        x = x.reshape(B, HW)
        if hw_pad != HW:
            x = jnp.pad(x, ((0, 0), (0, hw_pad - HW)))
        return x.reshape(B, rt_pad, _LANE)

    flow_p = plane4(flow_map)                     # native dtype, upcast in-kernel
    gt_p = plane4(gtflow)
    mask_p = plane3(event_mask_last)              # native dtype, compared !=0 in-kernel

    # Fold the (positive) flow scale into the +0.01 offset:
    #   cos = |s*f||g| / (s*f.g + 0.01) = |f||g| / (f.g + 0.01/s)
    eps_p = jnp.asarray([0.01], jnp.float32) * (
        jnp.asarray(dt_input, jnp.float32) /
        (jnp.asarray(dt_gt, jnp.float32) * jnp.float32(flow_scaling)))

    bytes_in = (flow_p.size * flow_p.dtype.itemsize
                + gt_p.size * gt_p.dtype.itemsize
                + mask_p.size * mask_p.dtype.itemsize)
    cost = pl.CostEstimate(
        flops=30 * B * hw_pad,
        transcendentals=3 * B * hw_pad,
        bytes_accessed=bytes_in + B * nt * 8 * _LANE * 4,
    )

    partials = pl.pallas_call(
        _ae_kernel,
        out_shape=jax.ShapeDtypeStruct((B, nt, 8, _LANE), jnp.float32),
        grid=(B, nt),
        in_specs=[
            pl.BlockSpec(memory_space=pltpu.MemorySpace.SMEM),            # eps'
            pl.BlockSpec((1, 2, R, _LANE), lambda b, t: (b, 0, t, 0)),    # flow
            pl.BlockSpec((1, 2, R, _LANE), lambda b, t: (b, 0, t, 0)),    # gtflow
            pl.BlockSpec((1, R, _LANE), lambda b, t: (b, t, 0)),          # event mask
        ],
        out_specs=pl.BlockSpec((1, 1, 8, _LANE), lambda b, t: (b, t, 0, 0)),
        compiler_params=pltpu.CompilerParams(
            dimension_semantics=("parallel", "parallel"),
            vmem_limit_bytes=32 * 1024 * 1024),
        cost_estimate=cost,
    )(eps_p, flow_p, gt_p, mask_p)

    sums = jnp.sum(partials, axis=(1, 3))         # (B, 8): rows 0..2 = err, outliers, num_valid
    denom = sums[:, 2] + 1e-9
    return sums[:, 0] / denom, sums[:, 1] / denom


def _reference(flow_map, gtflow, event_mask_last, dt_input, dt_gt, flow_scaling):
    # Pure-JAX transcription of AE.forward (B=1 semantics).
    flow = flow_map * flow_scaling * (dt_gt / dt_input)
    flow_norm = jnp.sqrt(jnp.sum(flow * flow, axis=1))
    gt_norm = jnp.sqrt(jnp.sum(gtflow * gtflow, axis=1))
    dot = jnp.sum(flow * gtflow, axis=1)
    cos_angle = jnp.clip(flow_norm * gt_norm / (dot + 0.01), -1 + 1e-5, 1 - 1e-5)
    error = jnp.arccos(cos_angle)
    mask = (event_mask_last != 0) & ~((gtflow[:, 0] == 0.0) & (gtflow[:, 1] == 0.0))
    mask = mask.reshape(flow.shape[0], -1)
    error = error.reshape(flow.shape[0], -1) * mask
    nv = jnp.sum(mask, axis=1)
    ae = jnp.sum(error, axis=1) / (nv + 1e-9)
    pct = jnp.sum(error > np.pi / 6.0, axis=1) / (nv + 1e-9)
    return ae, pct


if __name__ == "__main__":
    # B=1: the torch code's [B,1,H,W] / [B,H,W] broadcast only works for batch 1.
    B, H, W = 1, 16, 16
    key = jax.random.PRNGKey(0)
    k_flow, k_gt, k_zero, k_mask = jax.random.split(key, 4)

    flow_map = jax.random.normal(k_flow, (B, 2, H, W), jnp.float32)        # _flow_map[-1]
    gtflow = jax.random.normal(k_gt, (B, 2, H, W), jnp.float32)            # _gtflow
    zero_px = jax.random.bernoulli(k_zero, 0.2, (B, 1, H, W))
    gtflow = gtflow * (1.0 - zero_px.astype(jnp.float32))                  # zero-flow gt pixels
    event_mask = jax.random.bernoulli(k_mask, 0.7, (B, H, W)).astype(jnp.float32)  # _event_mask[:, -1]
    dt_input = jnp.float32(0.004)                                          # _dt_input
    dt_gt = jnp.float32(0.010)                                             # _dt_gt

    ae, pct = angular_error(flow_map, gtflow, event_mask, dt_input, dt_gt,
                            flow_scaling=128.0)
    jax.block_until_ready((ae, pct))

    ae_ref, pct_ref = _reference(flow_map, gtflow, event_mask, dt_input, dt_gt, 128.0)
    np.testing.assert_allclose(np.asarray(ae), np.asarray(ae_ref), rtol=1e-4, atol=1e-4)
    np.testing.assert_allclose(np.asarray(pct), np.asarray(pct_ref), rtol=1e-4, atol=1e-4)
    print("KERNEL_OK")
</pallas_src>

<mosaic_0001>
module attributes {stable_mosaic.version = 11 : i64} {
  func.func @_ae_kernel(%arg0: i32, %arg1: i32, %arg2: memref<1xf32, #tpu.memory_space<smem>>, %arg3: memref<1x2x2x128xf32, #tpu.memory_space<vmem>>, %arg4: memref<1x2x2x128xf32, #tpu.memory_space<vmem>>, %arg5: memref<1x2x128xf32, #tpu.memory_space<vmem>>, %arg6: memref<1x1x8x128xf32, #tpu.memory_space<vmem>>) attributes {dimension_semantics = [#tpu.dimension_semantics<parallel>, #tpu.dimension_semantics<parallel>], iteration_bounds = array<i64: 1, 1>, scalar_prefetch = 0 : i64, scratch_operands = 0 : i64, tpu.core_type = #tpu.core_type<tc>, window_params = [{transform_indices = @transform_0, window_bounds = array<i64: 1>}, {transform_indices = @transform_1, window_bounds = array<i64: 1, 2, 2, 128>}, {transform_indices = @transform_2, window_bounds = array<i64: 1, 2, 2, 128>}, {transform_indices = @transform_3, window_bounds = array<i64: 1, 2, 128>}, {transform_indices = @transform_4, window_bounds = array<i64: 1, 1, 8, 128>}]} {
    %c0 = arith.constant 0 : index
    %0 = memref.load %arg2[%c0] : memref<1xf32, #tpu.memory_space<smem>>
    %c0_0 = arith.constant 0 : index
    %c0_1 = arith.constant 0 : index
    %c0_2 = arith.constant 0 : index
    %c0_3 = arith.constant 0 : index
    %1 = vector.load %arg3[%c0_0, %c0_1, %c0_2, %c0_3] : memref<1x2x2x128xf32, #tpu.memory_space<vmem>>, vector<1x1x2x128xf32>
    %2 = vector.shape_cast %1 : vector<1x1x2x128xf32> to vector<2x128xf32>
    %c0_4 = arith.constant 0 : index
    %c1 = arith.constant 1 : index
    %c0_5 = arith.constant 0 : index
    %c0_6 = arith.constant 0 : index
    %3 = vector.load %arg3[%c0_4, %c1, %c0_5, %c0_6] : memref<1x2x2x128xf32, #tpu.memory_space<vmem>>, vector<1x1x2x128xf32>
    %4 = vector.shape_cast %3 : vector<1x1x2x128xf32> to vector<2x128xf32>
    %c0_7 = arith.constant 0 : index
    %c0_8 = arith.constant 0 : index
    %c0_9 = arith.constant 0 : index
    %c0_10 = arith.constant 0 : index
    %5 = vector.load %arg4[%c0_7, %c0_8, %c0_9, %c0_10] : memref<1x2x2x128xf32, #tpu.memory_space<vmem>>, vector<1x1x2x128xf32>
    %6 = vector.shape_cast %5 : vector<1x1x2x128xf32> to vector<2x128xf32>
    %c0_11 = arith.constant 0 : index
    %c1_12 = arith.constant 1 : index
    %c0_13 = arith.constant 0 : index
    %c0_14 = arith.constant 0 : index
    %7 = vector.load %arg4[%c0_11, %c1_12, %c0_13, %c0_14] : memref<1x2x2x128xf32, #tpu.memory_space<vmem>>, vector<1x1x2x128xf32>
    %8 = vector.shape_cast %7 : vector<1x1x2x128xf32> to vector<2x128xf32>
    %9 = arith.mulf %2, %2 : vector<2x128xf32>
    %10 = arith.mulf %4, %4 : vector<2x128xf32>
    %11 = arith.addf %9, %10 : vector<2x128xf32>
    %12 = arith.mulf %6, %6 : vector<2x128xf32>
    %13 = arith.mulf %8, %8 : vector<2x128xf32>
    %14 = arith.addf %12, %13 : vector<2x128xf32>
    %15 = arith.mulf %2, %6 : vector<2x128xf32>
    %16 = arith.mulf %4, %8 : vector<2x128xf32>
    %17 = arith.addf %15, %16 : vector<2x128xf32>
    %18 = arith.mulf %11, %14 : vector<2x128xf32>
    %19 = math.sqrt %18 : vector<2x128xf32>
    %20 = vector.broadcast %0 : f32 to vector<2x128xf32>
    %21 = arith.addf %17, %20 : vector<2x128xf32>
    %22 = arith.divf %19, %21 : vector<2x128xf32>
    %cst = arith.constant -0.999989986 : f32
    %cst_15 = arith.constant 0.999989986 : f32
    %23 = vector.broadcast %cst : f32 to vector<2x128xf32>
    %24 = arith.maximumf %23, %22 : vector<2x128xf32>
    %25 = vector.broadcast %cst_15 : f32 to vector<2x128xf32>
    %26 = arith.minimumf %25, %24 : vector<2x128xf32>
    %27 = math.absf %26 : vector<2x128xf32>
    %cst_16 = arith.constant -1.872930e-02 : f32
    %28 = vector.broadcast %cst_16 : f32 to vector<2x128xf32>
    %29 = arith.mulf %28, %27 : vector<2x128xf32>
    %cst_17 = arith.constant 7.426100e-02 : f32
    %30 = vector.broadcast %cst_17 : f32 to vector<2x128xf32>
    %31 = arith.addf %29, %30 : vector<2x128xf32>
    %32 = arith.mulf %31, %27 : vector<2x128xf32>
    %cst_18 = arith.constant -0.212114394 : f32
    %33 = vector.broadcast %cst_18 : f32 to vector<2x128xf32>
    %34 = arith.addf %32, %33 : vector<2x128xf32>
    %35 = arith.mulf %34, %27 : vector<2x128xf32>
    %cst_19 = arith.constant 1.57072878 : f32
    %36 = vector.broadcast %cst_19 : f32 to vector<2x128xf32>
    %37 = arith.addf %35, %36 : vector<2x128xf32>
    %cst_20 = arith.constant 1.000000e+00 : f32
    %38 = vector.broadcast %cst_20 : f32 to vector<2x128xf32>
    %39 = arith.subf %38, %27 : vector<2x128xf32>
    %40 = math.sqrt %39 : vector<2x128xf32>
    %41 = arith.mulf %40, %37 : vector<2x128xf32>
    %cst_21 = arith.constant 0.000000e+00 : f32
    %42 = vector.broadcast %cst_21 : f32 to vector<2x128xf32>
    %43 = arith.cmpf olt, %26, %42 : vector<2x128xf32>
    %cst_22 = arith.constant 3.14159274 : f32
    %44 = vector.broadcast %cst_22 : f32 to vector<2x128xf32>
    %45 = arith.subf %44, %41 : vector<2x128xf32>
    %46 = arith.select %43, %45, %41 : vector<2x128xi1>, vector<2x128xf32>
    %c0_23 = arith.constant 0 : index
    %c0_24 = arith.constant 0 : index
    %c0_25 = arith.constant 0 : index
    %47 = vector.load %arg5[%c0_23, %c0_24, %c0_25] : memref<1x2x128xf32, #tpu.memory_space<vmem>>, vector<1x2x128xf32>
    %48 = vector.shape_cast %47 : vector<1x2x128xf32> to vector<2x128xf32>
    %cst_26 = arith.constant 0.000000e+00 : f32
    %49 = vector.broadcast %cst_26 : f32 to vector<2x128xf32>
    %50 = arith.cmpf one, %48, %49 : vector<2x128xf32>
    %cst_27 = arith.constant 0.000000e+00 : f32
    %51 = vector.broadcast %cst_27 : f32 to vector<2x128xf32>
    %52 = arith.cmpf one, %14, %51 : vector<2x128xf32>
    %53 = arith.andi %50, %52 : vector<2x128xi1>
    %54 = arith.extui %53 : vector<2x128xi1> to vector<2x128xi32>
    %55 = arith.sitofp %54 : vector<2x128xi32> to vector<2x128xf32>
    %56 = arith.mulf %46, %55 : vector<2x128xf32>
    %cst_28 = arith.constant 0.866025388 : f32
    %57 = vector.broadcast %cst_28 : f32 to vector<2x128xf32>
    %58 = arith.cmpf olt, %26, %57 : vector<2x128xf32>
    %59 = arith.extui %58 : vector<2x128xi1> to vector<2x128xi32>
    %60 = arith.sitofp %59 : vector<2x128xi32> to vector<2x128xf32>
    %61 = arith.mulf %55, %60 : vector<2x128xf32>
    %cst_29 = arith.constant dense<0.000000e+00> : vector<128xf32>
    %62 = vector.multi_reduction <add>, %56, %cst_29 [0] : vector<2x128xf32> to vector<128xf32>
    %63 = vector.shape_cast %62 : vector<128xf32> to vector<1x128xf32>
    %cst_30 = arith.constant dense<0.000000e+00> : vector<128xf32>
    %64 = vector.multi_reduction <add>, %61, %cst_30 [0] : vector<2x128xf32> to vector<128xf32>
    %65 = vector.shape_cast %64 : vector<128xf32> to vector<1x128xf32>
    %cst_31 = arith.constant dense<0.000000e+00> : vector<128xf32>
    %66 = vector.multi_reduction <add>, %55, %cst_31 [0] : vector<2x128xf32> to vector<128xf32>
    %67 = vector.shape_cast %66 : vector<128xf32> to vector<1x128xf32>
    %cst_32 = arith.constant 0.000000e+00 : f32
    %68 = vector.broadcast %cst_32 : f32 to vector<5x128xf32>
    %69 = tpu.concatenate %63, %65, %67, %68 in 0 : vector<1x128xf32>, vector<1x128xf32>, vector<1x128xf32>, vector<5x128xf32> -> vector<8x128xf32>
    %c0_33 = arith.constant 0 : index
    %c0_34 = arith.constant 0 : index
    %c0_35 = arith.constant 0 : index
    %c0_36 = arith.constant 0 : index
    %70 = vector.load %arg6[%c0_33, %c0_34, %c0_35, %c0_36] : memref<1x1x8x128xf32, #tpu.memory_space<vmem>>, vector<1x1x8x128xf32>
    %71 = vector.shape_cast %70 : vector<1x1x8x128xf32> to vector<8x128xf32>
    %72 = vector.shape_cast %69 : vector<8x128xf32> to vector<1x1x8x128xf32>
    tpu.vector_store %arg6[%c0_33, %c0_34, %c0_35, %c0_36], %72 {strides = array<i32>} : memref<1x1x8x128xf32, #tpu.memory_space<vmem>>, vector<1x1x8x128xf32>,
    return
  }
  func.func @transform_0(%arg0: i32, %arg1: i32) -> i32 {
    %c0_i32 = arith.constant 0 : i32
    %c0_i32_0 = arith.constant 0 : i32
    return %c0_i32 : i32
  }
  func.func @transform_1(%arg0: i32, %arg1: i32) -> (i32, i32, i32, i32) {
    %c0_i32 = arith.constant 0 : i32
    %c0_i32_0 = arith.constant 0 : i32
    %c0_i32_1 = arith.constant 0 : i32
    return %arg0, %c0_i32, %arg1, %c0_i32_0 : i32, i32, i32, i32
  }
  func.func @transform_2(%arg0: i32, %arg1: i32) -> (i32, i32, i32, i32) {
    %c0_i32 = arith.constant 0 : i32
    %c0_i32_0 = arith.constant 0 : i32
    %c0_i32_1 = arith.constant 0 : i32
    return %arg0, %c0_i32, %arg1, %c0_i32_0 : i32, i32, i32, i32
  }
  func.func @transform_3(%arg0: i32, %arg1: i32) -> (i32, i32, i32) {
    %c0_i32 = arith.constant 0 : i32
    %c0_i32_0 = arith.constant 0 : i32
    return %arg0, %arg1, %c0_i32 : i32, i32, i32
  }
  func.func @transform_4(%arg0: i32, %arg1: i32) -> (i32, i32, i32, i32) {
    %c0_i32 = arith.constant 0 : i32
    %c0_i32_0 = arith.constant 0 : i32
    %c0_i32_1 = arith.constant 0 : i32
    return %arg0, %arg1, %c0_i32, %c0_i32_0 : i32, i32, i32, i32
  }
}

</mosaic_0001>

<bundles_post_ra>
// kernel: tpu_custom_call.1
= control target key start
LH: loop header
LB: loop body
LE: loop exit
PB: predicated region body
PF: predicated region fallthrough
CT: control target
= control target key end

     0   :  { %10 = vsyncpa [#allocation4], 0  ;;  %s323_s0 = inlined_call_operand.<no memory space> [shape: f32[1], index: 0, kind: input, shape index: {}]   ;;  %s324_s1 = inlined_call_operand.hbm [shape: f32[1,2,2,128], index: 1, kind: input, shape index: {}]   ;;  %s325_s2 = inlined_call_operand.hbm [shape: f32[1,2,2,128], index: 2, kind: input, shape index: {}]   ;;  %s326_s3 = inlined_call_operand.vmem [shape: f32[1,2,128], index: 3, kind: input, shape index: {}]   ;;  %s327_s4 = inlined_call_operand.hbm [shape: f32[1,1,8,128], index: 4, kind: output, shape index: {}]  }
   0x1   :  { %11 = vsyncpa [#allocation7], 0 }
   0x2   :  { %12 = vsyncpa [#allocation5], 0  ;;  %s19_s17 = sshll.u32 %s324_s1, 4  ;;  %s273_s18 = smov [#allocation3]   ;;  %s20_s17 = int_to_ptr.hbm [resolvable:$true] %s19_s17 }
   0x3   :  { %s21_s19 = sshll.u32 %s273_s18, 4  ;;  %s32_s22 = sshll.u32 %s325_s2, 4  ;;  %s22_s19 = int_to_ptr.vmem [resolvable:$true] %s21_s19  ;;  %s33_s22 = int_to_ptr.hbm [resolvable:$true] %s32_s22 }
   0x4   :  { %s274_s23 = smov 32   ;;  %s275_s24 = smov 2  }
   0x5   :  { %27 = dma.hbm_to_vmem [thread:$0]  %s20_s17, 64, %s22_s19, [#allocation4], %s274_s23, %s274_s23, %s275_s24  }
   0x6   :  { %s276_s25 = smov [#allocation6]  }
   0x7   :  { %s34_s26 = sshll.u32 %s276_s25, 4  ;;  %s35_s26 = int_to_ptr.vmem [resolvable:$true] %s34_s26 }
   0x8   :  { %40 = dma.hbm_to_vmem [thread:$0]  %s33_s22, 64, %s35_s26, [#allocation7], %s274_s23, %s274_s23, %s275_s24  }
   0x9   :  { %267 = dma.done.wait [#allocation4], 64  }
   0xa   :  { %268 = vsyncadd [#allocation4], 4294967232 }
   0xb   :  { %269 = dma.done.wait [#allocation7], 64  }
   0xc   :  { %270 = vsyncadd [#allocation7], 4294967232  ;;  %v52_v0 = vld [vmem:[#allocation3] sm:$0x3]  ;;  %v54_v1 = vld [vmem:[#allocation3 + $0x2] sm:$0x3]  ;;  %v80_v11 = vstv %s323_s0 }
   0xd   :  { %v55_v2 = vld [vmem:[#allocation6] sm:$0x3]  ;;  %v57_v3 = vld [vmem:[#allocation6 + $0x2] sm:$0x3]  ;;  %v58_v4 = vmul.f32 %v52_v0, %v52_v0  ;;  %v59_v5 = vmul.f32 %v54_v1, %v54_v1  ;;  %v123_v41 = vld [vmem:[%s326_s3] sm:$0x3] }
   0xe   :  { %v61_v6 = vmul.f32 %v55_v2, %v55_v2  ;;  %v64_v7 = vmul.f32 %v55_v2, %v52_v0  ;;  %v62_v8 = vmul.f32 %v57_v3, %v57_v3  ;;  %v65_v9 = vmul.f32 %v57_v3, %v54_v1  ;;  %s278_s3 = smov [#allocation8]   ;;  %s169_s5 = sshll.u32 %s327_s4, 4  ;;  %s170_s5 = int_to_ptr.hbm [resolvable:$true] %s169_s5 }
   0xf   :  { %v60_v10 = vadd.f32 %v59_v5, %v58_v4  ;;  %vm124_vm6 = vcmp.ne.f32.partialorder %v123_v41, 0.0  ;;  %v277_v46 = vmov 0.0   ;;  %vm134_vm10 = vcmask 1041408   ;;  %s167_s28 = sshll.u32 %s278_s3, 4  ;;  %s168_s28 = int_to_ptr.vmem [resolvable:$true] %s167_s28 }
  0x10   :  { %v63_v12 = vadd.f32 %v62_v8, %v61_v6  ;;  %v66_v13 = vadd.f32 %v65_v9, %v64_v7  ;;  %vm156_vm14 = vcmask 1040384   ;;  %vm159_vm15 = vcmask 1042432  }
  0x12   :  { %v67_v14 = vmul.f32 %v63_v12, %v60_v10  ;;  %v81_v15 = vadd.f32 %v80_v11, %v66_v13  ;;  %vm125_vm7 = vcmp.ne.f32.partialorder %v63_v12, 0.0 }
  0x13   :  { %vm126_vm8 = vmand %vm124_vm6, %vm125_vm7 }
  0x14   :  { %189 = vrsqrt.f32 %v67_v14  ;;  %vm87_vm0 = vweird.f32 %v81_v15  ;;  %v93_v22 = vand.u32 2147483648, %v81_v15  ;;  %v91_v24 = vand.u32 2147483647, %v81_v15 }
  0x15   :  { %191 = vrcp.f32 %v81_v15  ;;  %vm75_vm4 = vcmp.eq.f32.partialorder %v67_v14, inf  ;;  %v78_v30 = vand.u32 2147483648, %v67_v14  ;;  %vm77_vm5 = vcmp.eq.f32.partialorder %v67_v14, 0.0 }
  0x16   :  { %v94_v28 = vor.u32 1.1754944e-38, %v93_v22  ;;  %vm92_vm3 = vcmp.eq.f32.partialorder %v91_v24, 8.507059e+37  ;;  %v181_v47 = vsel %vm126_vm8, 1.0, %v277_v46 }
  0x17   :  { %v149_v57 = vsel %vm134_vm10, %v181_v47, 0.0 }
  0x18   :  { %v150_v62 = vrot.slane %v149_v57, 4 }
  0x1a   :  { %v190_v16 = vpop.eup %189  ;;  %v151_v3 = vadd.f32 %v150_v62, %v149_v57 }
  0x1b   :  { %v192_v17 = vpop.eup %191  ;;  %v69_v18 = vmul.f32 %v190_v16, %v67_v14 }
  0x1c   :  { %v83_v19 = vmul.f32 %v192_v17, %v81_v15  ;;  %vm88_vm1 = vweird.f32 %v192_v17  ;;  %v152_v8 = vrot.slane %v151_v3, 2 }
  0x1d   :  { %v70_v20 = vmul.f32 %v190_v16, %v69_v18  ;;  %vm89_vm2 = vmor %vm87_vm0, %vm88_vm1 }
  0x1e   :  { %v84_v21 = vsub.f32 1.0, %v83_v19  ;;  %v153_v12 = vadd.f32 %v152_v8, %v151_v3 }
  0x1f   :  { %v71_v23 = vmul.f32 0.5, %v70_v20 }
  0x20   :  { %v85_v25 = vmul.f32 %v192_v17, %v84_v21 }
  0x21   :  { %v72_v26 = vsub.f32 1.5, %v71_v23 }
  0x22   :  { %v86_v27 = vadd.f32 %v192_v17, %v85_v25 }
  0x23   :  { %v73_v29 = vmul.f32 %v190_v16, %v72_v26  ;;  %v154_v16 = vrot.slane %v153_v12, 1 }
  0x24   :  { %v90_v31 = vsel %vm89_vm2, %v192_v17, %v86_v27 }
  0x25   :  { %v74_v32 = vmul.f32 %v73_v29, %v67_v14  ;;  %v95_v33 = vsel %vm92_vm3, %v94_v28, %v90_v31  ;;  %v155_v20 = vadd.f32 %v154_v16, %v153_v12 }
  0x27   :  { %v76_v34 = vsel %vm75_vm4, %v67_v14, %v74_v32 }
  0x28   :  { %v79_v35 = vsel %vm77_vm5, %v78_v30, %v76_v34 }
  0x29   :  { %v96_v36 = vmul.f32 %v95_v33, %v79_v35 }
  0x2b   :  { %v180_v37 = vclamps-f32 %v96_v36, 0.99999 }
  0x2d   :  { %v99_v38 = vand.u32 2147483647, %v180_v37  ;;  %vm130_vm9 = vcmp.lt.f32.partialorder %v180_v37, 0.8660254  ;;  %vm120_vm13 = vcmp.lt.f32.partialorder %v180_v37, 0.0 }
  0x2e   :  { %v182_v48 = vsel %vm130_vm9, 1.0, %v277_v46 }
  0x2f   :  { %v100_v39 = vmul.f32 -0.0187293, %v99_v38  ;;  %v106_v40 = vsub.f32 1.0, %v99_v38  ;;  %v133_v51 = vmul.f32 %v182_v48, %v181_v47 }
  0x31   :  { %193 = vrsqrt.f32 %v106_v40  ;;  %v101_v42 = vadd.f32 0.074261, %v100_v39  ;;  %v142_v55 = vsel %vm134_vm10, %v133_v51, 0.0  ;;  %vm114_vm11 = vcmp.eq.f32.partialorder %v106_v40, inf }
  0x32   :  { %v117_v58 = vand.u32 2147483648, %v106_v40  ;;  %vm116_vm12 = vcmp.eq.f32.partialorder %v106_v40, 0.0  ;;  %v143_v61 = vrot.slane %v142_v55, 4 }
  0x33   :  { %v102_v43 = vmul.f32 %v101_v42, %v99_v38 }
  0x34   :  { %v144_v2 = vadd.f32 %v143_v61, %v142_v55 }
  0x35   :  { %v103_v49 = vadd.f32 -0.2121144, %v102_v43 }
  0x36   :  { %v145_v6 = vrot.slane %v144_v2, 2 }
  0x37   :  { %v194_v44 = vpop.eup %193  ;;  %v104_v53 = vmul.f32 %v103_v49, %v99_v38 }
  0x38   :  { %v108_v45 = vmul.f32 %v194_v44, %v106_v40  ;;  %v146_v11 = vadd.f32 %v145_v6, %v144_v2 }
  0x39   :  { %v105_v59 = vadd.f32 1.5707288, %v104_v53 }
  0x3a   :  { %v109_v50 = vmul.f32 %v194_v44, %v108_v45  ;;  %v147_v15 = vrot.slane %v146_v11, 1 }
  0x3c   :  { %v110_v52 = vmul.f32 0.5, %v109_v50  ;;  %v148_v19 = vadd.f32 %v147_v15, %v146_v11 }
  0x3e   :  { %v111_v54 = vsub.f32 1.5, %v110_v52 }
  0x40   :  { %v112_v56 = vmul.f32 %v194_v44, %v111_v54 }
  0x42   :  { %v113_v60 = vmul.f32 %v112_v56, %v106_v40 }
  0x44   :  { %v115_v63 = vsel %vm114_vm11, %v106_v40, %v113_v60 }
  0x45   :  { %v118_v0 = vsel %vm116_vm12, %v117_v58, %v115_v63 }
  0x46   :  { %v119_v1 = vmul.f32 %v118_v0, %v105_v59 }
  0x48   :  { %v121_v4 = vsub.f32 3.1415927, %v119_v1 }
  0x4a   :  { %v122_v5 = vsel %vm120_vm13, %v121_v4, %v119_v1 }
  0x4b   :  { %v129_v7 = vmul.f32 %v181_v47, %v122_v5 }
  0x4d   :  { %v135_v9 = vsel %vm134_vm10, %v129_v7, 0.0 }
  0x4e   :  { %v136_v10 = vrot.slane %v135_v9, 4 }
  0x50   :  { %v137_v13 = vadd.f32 %v136_v10, %v135_v9 }
  0x52   :  { %v138_v14 = vrot.slane %v137_v13, 2 }
  0x54   :  { %v139_v17 = vadd.f32 %v138_v14, %v137_v13 }
  0x56   :  { %v140_v18 = vrot.slane %v139_v17, 1 }
  0x58   :  { %v141_v21 = vadd.f32 %v140_v18, %v139_v17 }
  0x5a   :  { %v157_v22 = vsel %vm156_vm14, %v141_v21, %v148_v19 }
  0x5b   :  { %v158_v23 = vsel %vm134_vm10, %v157_v22, %v155_v20 }
  0x5c   :  { %v160_v24 = vsel %vm159_vm15, %v158_v23, 0.0 }
  0x5d   :  { %161 = vst [vmem:[#allocation8] sm:$0xff] %v160_v24 }
  0x5e   :  { %172 = dma.vmem_to_hbm [thread:$0]  %s168_s28, 128, %s170_s5, [#allocation5]  }
  0x5f   :  { %271 = dma.done.wait [#allocation5], 128  }
  0x60   :  { %272 = vsyncadd [#allocation5], 4294967168 }
  0x61   :  { %177 = vsyncpa [#allocation4], 1 }
  0x62   :  { %178 = vsyncpa [#allocation7], 1 }
  0x63   :  { %179 = vsyncpa [#allocation5], 1 }

</bundles_post_ra>
